<compile_context>
chip_gen: v7x
topology: tpu7x:2x2x1
jax: 0.10.0
libtpu: 0.0.40
codegen_flags: <defaults>
</compile_context>

<pallas_src>
import functools

import jax
import jax.numpy as jnp
from jax.experimental import pallas as pl
from jax.experimental.pallas import tpu as pltpu

K_SIZE = 4   # ConvBlock1: kernel_size=4
STRIDE = 2   # stride=2
PAD = 1      # padding=1, dilation=1


def _conv_prelu_kernel(xph_ref, wq_ref, alpha_ref, o_ref, *, nb, ho, wo, cin, cout):
    """Fused stride-2 4x4 conv + PReLU for `nb` images.

    xph_ref   : (nb, Hh, Wh, 4*Cin) -- padded input, 2x2 spatial parity phases
                                       packed with channels into the lane dim:
                                       last-dim index = (2r+s)*Cin + c for
                                       padded pixel (2i+r, 2j+s).
    wq_ref    : (4, Cout, 4*Cin)    -- per window-offset (a,b) weight blocks,
                                       q = 2a+b; tap (ki,kj) = (2a+r, 2b+s).
    alpha_ref : (1,) in SMEM        -- PReLU slope (runtime scalar).
    o_ref     : (nb, Cout, Ho*Wo)   -- channel-first, lane dim = Ho*Wo.
    """
    alpha = alpha_ref[0]
    wmats = [wq_ref[q] for q in range(4)]            # each (Cout, 4*Cin), resident
    for m in range(nb):                              # static unroll, nb is small
        acc = jnp.zeros((cout, ho * wo), jnp.float32)
        for a in range(2):
            for b in range(2):
                q = 2 * a + b
                # Shifted window: all 4 phases x Cin channels for offset (a,b).
                win = xph_ref[m, a:a + ho, b:b + wo, :]      # (Ho, Wo, 4*Cin)
                pm = win.reshape(ho * wo, 4 * cin)            # on-chip "im2col"
                # (Cout, K) x (M, K)^T -> (Cout, M): lane-dense accumulator.
                acc = acc + jax.lax.dot_general(
                    wmats[q], pm,
                    (((1,), (1,)), ((), ())),
                    preferred_element_type=jnp.float32)
        # PReLU epilogue; lane-dense store (lane dim = Ho*Wo).
        o_ref[m] = jnp.where(acc >= 0.0, acc, alpha * acc).astype(o_ref.dtype)


def _images_per_step(n, per_img_bytes):
    """Images per grid step: keep VMEM modest and >=2 steps when N>=2 (v7x)."""
    budget = 4 << 20                                  # ~4 MiB/buffer, safe on v5e
    cap = max(1, budget // max(per_img_bytes, 1))
    if n >= 2:
        cap = min(cap, n // 2)                        # keep >= 2 parallel steps
    nb = 1
    for d in range(1, n + 1):
        if n % d == 0 and d <= cap:
            nb = d
    return nb


def conv_block1(x_nchw, weight, alpha):
    """ConvBlock1.forward: PReLU(Conv2d(x, k=4, s=2, p=1, bias=False))."""
    n, cin, h, w = x_nchw.shape
    cout = weight.shape[0]
    ho = (h + 2 * PAD - K_SIZE) // STRIDE + 1
    wo = (w + 2 * PAD - K_SIZE) // STRIDE + 1

    hp, wp = h + 2 * PAD, w + 2 * PAD
    eh, ew = hp % 2, wp % 2                           # pad to even for parity split
    hh, wh = (hp + eh) // 2, (wp + ew) // 2

    # --- wrapper layout (2 cheap passes: one pad, one transpose; no NHWC pass,
    # --- no post-kernel transpose) -------------------------------------------
    x = x_nchw.astype(jnp.float32)
    xpad = jnp.pad(x, ((0, 0), (0, 0), (PAD, PAD + eh), (PAD, PAD + ew)))
    # (n, c, hh, 2, wh, 2) dims (n,c,i,r,j,s) -> (n,i,j,r,s,c) -> (n,hh,wh,4c)
    xph = xpad.reshape(n, cin, hh, 2, wh, 2)
    xph = xph.transpose(0, 2, 4, 3, 5, 1).reshape(n, hh, wh, 4 * cin)

    # Conv2d weight (Cout, Cin, 4, 4) -> (4, Cout, 4*Cin), q = 2a+b,
    # K index = (2r+s)*Cin + c, matching the xph lane packing above.
    wq = weight.astype(jnp.float32).reshape(cout, cin, 2, 2, 2, 2)  # (co,c,a,r,b,s)
    wq = wq.transpose(2, 4, 0, 3, 5, 1).reshape(4, cout, 4 * cin)

    alpha_arr = jnp.asarray(alpha, jnp.float32).reshape(1)

    per_img_bytes = (hh * wh * 4 * cin + cout * ho * wo) * 4
    nb = _images_per_step(n, per_img_bytes)

    kernel = functools.partial(
        _conv_prelu_kernel, nb=nb, ho=ho, wo=wo, cin=cin, cout=cout)

    in_bytes = xph.size * 4 + wq.size * 4 + 4
    out_bytes = n * cout * ho * wo * 4

    out = pl.pallas_call(
        kernel,
        out_shape=jax.ShapeDtypeStruct((n, cout, ho * wo), jnp.float32),
        grid=(n // nb,),
        in_specs=[
            pl.BlockSpec((nb, hh, wh, 4 * cin), lambda i: (i, 0, 0, 0)),
            pl.BlockSpec((4, cout, 4 * cin), lambda i: (0, 0, 0)),      # resident
            pl.BlockSpec(memory_space=pltpu.MemorySpace.SMEM),          # alpha
        ],
        out_specs=pl.BlockSpec((nb, cout, ho * wo), lambda i: (i, 0, 0)),
        compiler_params=pltpu.CompilerParams(
            dimension_semantics=("parallel",)),        # batch axis -> megacore
        cost_estimate=pl.CostEstimate(
            flops=2 * n * ho * wo * cout * cin * K_SIZE * K_SIZE,
            transcendentals=0,
            bytes_accessed=in_bytes + out_bytes),
    )(xph, wq, alpha_arr)

    # Pure last-dim split (no transpose): output is already channel-first NCHW.
    return out.reshape(n, cout, ho, wo)


def _reference(x_nchw, weight, alpha):
    y = jax.lax.conv_general_dilated(
        x_nchw, weight, window_strides=(STRIDE, STRIDE),
        padding=((PAD, PAD), (PAD, PAD)),
        dimension_numbers=("NCHW", "OIHW", "NCHW"),
        precision=jax.lax.Precision.HIGHEST)
    a = jnp.asarray(alpha, jnp.float32).reshape(())
    return jnp.where(y >= 0.0, y, a * y)


if __name__ == "__main__":
    key = jax.random.PRNGKey(0)
    kx, kw = jax.random.split(key)

    N, CIN, H, W = 2, 4, 16, 16      # dinput_size = 4
    COUT = 8                         # doutput_size = 8

    x = jax.random.normal(kx, (N, CIN, H, W), jnp.float32)
    weight = jax.random.normal(kw, (COUT, CIN, K_SIZE, K_SIZE), jnp.float32)
    weight = weight / jnp.sqrt(jnp.float32(CIN * K_SIZE * K_SIZE))
    alpha = jnp.full((1,), 0.25, jnp.float32)   # nn.PReLU() default init, runtime operand

    out = jax.jit(conv_block1)(x, weight, alpha)
    out = jax.block_until_ready(out)
    assert out.shape == (N, COUT, H // 2, W // 2), out.shape

    ref = _reference(x, weight, alpha)
    max_err = float(jnp.max(jnp.abs(out - ref)))
    assert jnp.allclose(out, ref, atol=1e-2, rtol=1e-2), max_err

    print("KERNEL_OK")
</pallas_src>

<mosaic_0001>
module attributes {stable_mosaic.version = 11 : i64} {
  func.func @_conv_prelu_kernel(%arg0: i32, %arg1: memref<1x9x9x16xf32, #tpu.memory_space<vmem>>, %arg2: memref<4x8x16xf32, #tpu.memory_space<vmem>>, %arg3: memref<1xf32, #tpu.memory_space<smem>>, %arg4: memref<1x8x64xf32, #tpu.memory_space<vmem>>) attributes {dimension_semantics = [#tpu.dimension_semantics<parallel>], iteration_bounds = array<i64: 2>, scalar_prefetch = 0 : i64, scratch_operands = 0 : i64, tpu.core_type = #tpu.core_type<tc>, window_params = [{transform_indices = @transform_0, window_bounds = array<i64: 1, 9, 9, 16>}, {pipeline_mode = #tpu.pipeline_mode<synchronous>, transform_indices = @transform_1, window_bounds = array<i64: 4, 8, 16>}, {transform_indices = @transform_2, window_bounds = array<i64: 1>}, {transform_indices = @transform_3, window_bounds = array<i64: 1, 8, 64>}]} {
    %c0 = arith.constant 0 : index
    %0 = memref.load %arg3[%c0] : memref<1xf32, #tpu.memory_space<smem>>
    %c0_0 = arith.constant 0 : index
    %c0_1 = arith.constant 0 : index
    %c0_2 = arith.constant 0 : index
    %1 = vector.load %arg2[%c0_0, %c0_1, %c0_2] : memref<4x8x16xf32, #tpu.memory_space<vmem>>, vector<1x8x16xf32>
    %2 = vector.shape_cast %1 : vector<1x8x16xf32> to vector<8x16xf32>
    %c1 = arith.constant 1 : index
    %c0_3 = arith.constant 0 : index
    %c0_4 = arith.constant 0 : index
    %3 = vector.load %arg2[%c1, %c0_3, %c0_4] : memref<4x8x16xf32, #tpu.memory_space<vmem>>, vector<1x8x16xf32>
    %4 = vector.shape_cast %3 : vector<1x8x16xf32> to vector<8x16xf32>
    %c2 = arith.constant 2 : index
    %c0_5 = arith.constant 0 : index
    %c0_6 = arith.constant 0 : index
    %5 = vector.load %arg2[%c2, %c0_5, %c0_6] : memref<4x8x16xf32, #tpu.memory_space<vmem>>, vector<1x8x16xf32>
    %6 = vector.shape_cast %5 : vector<1x8x16xf32> to vector<8x16xf32>
    %c3 = arith.constant 3 : index
    %c0_7 = arith.constant 0 : index
    %c0_8 = arith.constant 0 : index
    %7 = vector.load %arg2[%c3, %c0_7, %c0_8] : memref<4x8x16xf32, #tpu.memory_space<vmem>>, vector<1x8x16xf32>
    %8 = vector.shape_cast %7 : vector<1x8x16xf32> to vector<8x16xf32>
    %cst = arith.constant 0.000000e+00 : f32
    %9 = vector.broadcast %cst : f32 to vector<8x64xf32>
    %c0_9 = arith.constant 0 : index
    %c0_10 = arith.constant 0 : index
    %c0_11 = arith.constant 0 : index
    %c0_12 = arith.constant 0 : index
    %10 = vector.load %arg1[%c0_9, %c0_10, %c0_11, %c0_12] : memref<1x9x9x16xf32, #tpu.memory_space<vmem>>, vector<1x8x8x16xf32>
    %11 = vector.shape_cast %10 : vector<1x8x8x16xf32> to vector<8x8x16xf32>
    %12 = vector.shape_cast %11 : vector<8x8x16xf32> to vector<64x16xf32>
    %cst_13 = arith.constant dense<0.000000e+00> : vector<8x64xf32>
    %13 = tpu.matmul %2, %12, %cst_13 {dimension_numbers = #tpu.dot_dimension_numbers<[1], [1], [0], [0], [0, 0, 1, 0], [], []>} : vector<8x16xf32>, vector<64x16xf32>, vector<8x64xf32> -> vector<8x64xf32>
    %14 = arith.addf %9, %13 : vector<8x64xf32>
    %c0_14 = arith.constant 0 : index
    %c0_15 = arith.constant 0 : index
    %c1_16 = arith.constant 1 : index
    %c0_17 = arith.constant 0 : index
    %15 = vector.load %arg1[%c0_14, %c0_15, %c1_16, %c0_17] : memref<1x9x9x16xf32, #tpu.memory_space<vmem>>, vector<1x8x8x16xf32>
    %16 = vector.shape_cast %15 : vector<1x8x8x16xf32> to vector<8x8x16xf32>
    %17 = vector.shape_cast %16 : vector<8x8x16xf32> to vector<64x16xf32>
    %cst_18 = arith.constant dense<0.000000e+00> : vector<8x64xf32>
    %18 = tpu.matmul %4, %17, %cst_18 {dimension_numbers = #tpu.dot_dimension_numbers<[1], [1], [0], [0], [0, 0, 1, 0], [], []>} : vector<8x16xf32>, vector<64x16xf32>, vector<8x64xf32> -> vector<8x64xf32>
    %19 = arith.addf %14, %18 : vector<8x64xf32>
    %c0_19 = arith.constant 0 : index
    %c1_20 = arith.constant 1 : index
    %c0_21 = arith.constant 0 : index
    %c0_22 = arith.constant 0 : index
    %20 = vector.load %arg1[%c0_19, %c1_20, %c0_21, %c0_22] : memref<1x9x9x16xf32, #tpu.memory_space<vmem>>, vector<1x8x8x16xf32>
    %21 = vector.shape_cast %20 : vector<1x8x8x16xf32> to vector<8x8x16xf32>
    %22 = vector.shape_cast %21 : vector<8x8x16xf32> to vector<64x16xf32>
    %cst_23 = arith.constant dense<0.000000e+00> : vector<8x64xf32>
    %23 = tpu.matmul %6, %22, %cst_23 {dimension_numbers = #tpu.dot_dimension_numbers<[1], [1], [0], [0], [0, 0, 1, 0], [], []>} : vector<8x16xf32>, vector<64x16xf32>, vector<8x64xf32> -> vector<8x64xf32>
    %24 = arith.addf %19, %23 : vector<8x64xf32>
    %c0_24 = arith.constant 0 : index
    %c1_25 = arith.constant 1 : index
    %c1_26 = arith.constant 1 : index
    %c0_27 = arith.constant 0 : index
    %25 = vector.load %arg1[%c0_24, %c1_25, %c1_26, %c0_27] : memref<1x9x9x16xf32, #tpu.memory_space<vmem>>, vector<1x8x8x16xf32>
    %26 = vector.shape_cast %25 : vector<1x8x8x16xf32> to vector<8x8x16xf32>
    %27 = vector.shape_cast %26 : vector<8x8x16xf32> to vector<64x16xf32>
    %cst_28 = arith.constant dense<0.000000e+00> : vector<8x64xf32>
    %28 = tpu.matmul %8, %27, %cst_28 {dimension_numbers = #tpu.dot_dimension_numbers<[1], [1], [0], [0], [0, 0, 1, 0], [], []>} : vector<8x16xf32>, vector<64x16xf32>, vector<8x64xf32> -> vector<8x64xf32>
    %29 = arith.addf %24, %28 : vector<8x64xf32>
    %cst_29 = arith.constant 0.000000e+00 : f32
    %30 = vector.broadcast %cst_29 : f32 to vector<8x64xf32>
    %31 = arith.cmpf oge, %29, %30 : vector<8x64xf32>
    %32 = vector.broadcast %0 : f32 to vector<8x64xf32>
    %33 = arith.mulf %32, %29 : vector<8x64xf32>
    %34 = arith.select %31, %29, %33 : vector<8x64xi1>, vector<8x64xf32>
    %c0_30 = arith.constant 0 : index
    %c0_31 = arith.constant 0 : index
    %c0_32 = arith.constant 0 : index
    %35 = vector.load %arg4[%c0_30, %c0_31, %c0_32] : memref<1x8x64xf32, #tpu.memory_space<vmem>>, vector<1x8x64xf32>
    %36 = vector.shape_cast %35 : vector<1x8x64xf32> to vector<8x64xf32>
    %37 = vector.shape_cast %34 : vector<8x64xf32> to vector<1x8x64xf32>
    tpu.vector_store %arg4[%c0_30, %c0_31, %c0_32], %37 {strides = array<i32>} : memref<1x8x64xf32, #tpu.memory_space<vmem>>, vector<1x8x64xf32>,
    return
  }
  func.func @transform_0(%arg0: i32) -> (i32, i32, i32, i32) {
    %c0_i32 = arith.constant 0 : i32
    %c0_i32_0 = arith.constant 0 : i32
    %c0_i32_1 = arith.constant 0 : i32
    %c0_i32_2 = arith.constant 0 : i32
    return %arg0, %c0_i32, %c0_i32_0, %c0_i32_1 : i32, i32, i32, i32
  }
  func.func @transform_1(%arg0: i32) -> (i32, i32, i32) {
    %c0_i32 = arith.constant 0 : i32
    %c0_i32_0 = arith.constant 0 : i32
    %c0_i32_1 = arith.constant 0 : i32
    %c0_i32_2 = arith.constant 0 : i32
    return %c0_i32, %c0_i32_0, %c0_i32_1 : i32, i32, i32
  }
  func.func @transform_2(%arg0: i32) -> i32 {
    %c0_i32 = arith.constant 0 : i32
    %c0_i32_0 = arith.constant 0 : i32
    return %c0_i32 : i32
  }
  func.func @transform_3(%arg0: i32) -> (i32, i32, i32) {
    %c0_i32 = arith.constant 0 : i32
    %c0_i32_0 = arith.constant 0 : i32
    %c0_i32_1 = arith.constant 0 : i32
    return %arg0, %c0_i32, %c0_i32_0 : i32, i32, i32
  }
}

</mosaic_0001>

<bundles_post_ra>
// kernel: conv_block1.1
= control target key start
LH: loop header
LB: loop body
LE: loop exit
PB: predicated region body
PF: predicated region fallthrough
CT: control target
= control target key end

     0   :  { %s952_s14 = smov 0   ;;  %s1067_s0 = inlined_call_operand.vmem [shape: f32[2,9,9,16], index: 0, kind: input, shape index: {}]   ;;  %s1068_s1 = inlined_call_operand.vmem [shape: f32[4,8,16], index: 1, kind: input, shape index: {}]   ;;  %s1069_s2 = inlined_call_operand.<no memory space> [shape: f32[1], index: 2, kind: input, shape index: {}]   ;;  %s1070_s3 = inlined_call_operand.vmem [shape: f32[2,8,64], index: 3, kind: output, shape index: {}]  }
   0x1   :  { %8 = sst [smem:[#allocation2]] %s1069_s2 }
   0x2 LB: > { %s661_s15 = sadd.s32 4294967295, %s924_s14   ;;  %p665_p0 = scmp.ge.s32.totalorder %s924_s14, 1  ;;  %s924_s14 = sphi %s952_s14, %s14_s14  }
   0x3   : > { %p138_p1 = scmp.lt.s32.totalorder %s924_s14, 3 }
   0x5   : > { %p139_p2 = pnand %p665_p0, %p138_p1 }
   0x6   : > { %p161_p3 = scmp.lt.s32.totalorder (!%p139_p2), %s661_s15, 1  ;;  %v926_v0 = vmov (!%p139_p2), 0.0|0.0   ;;  %vm927_vm0 = vmmov (!%p139_p2), 0   ;;  %v928_v1 = vmov (!%p139_p2), 0.0   ;;  %vm194_vm1 = vcmask (!%p139_p2), 130048   ;;  %v668_v28 = vld [vmem:[%s1068_s1 + $0x8] sm:$0xff] (!%p139_p2) }
   0x7   : > { %142 = sbr.rel (%p139_p2) target bundleno = 303 (0x12f), region = 32  ;;  %837 = vmatprep.subr.bf16.mxu1 (!%p139_p2), %v926_v0  ;;  %869 = vmatprep.subr.bf16.mxu0 (!%p139_p2), %v926_v0  ;;  %vm974_vm2 = vmpackc.low (!%p139_p2), %vm194_vm1, %vm194_vm1  ;;  %v669_v30 = vld [vmem:[%s1068_s1 + $0x10] sm:$0xff] (!%p139_p2)  ;;  %v171_v39 = vld [vmem:[%s1068_s1] sm:$0xff] (!%p139_p2)  ;;  %s170_s27 = sld [smem:[#allocation2]] (!%p139_p2)  ;;  %vm606_vm4 = vcmask (!%p139_p2), 523264  }
   0x8   : > { %777 = vmatprep.mubr.msk.f32.mxu1 (!%p139_p2), %vm927_vm0, %v928_v1  ;;  %815 = vmatprep.mubr.msk.f32.mxu0 (!%p139_p2), %vm927_vm0, %v928_v1  ;;  %v670_v40 = vld [vmem:[%s1068_s1 + $0x18] sm:$0xff] (!%p139_p2) }
   0xd   : > { %v603_v43 = vstv (!%p139_p2), %s170_s27 }
   0xe   : > { %s1074_s15 = smov (!%p161_p3, %s661_s15), 1 }
   0xf   : > { %s906_s2 = smul.u32 144, %s1074_s15  ;;  %s667_s28 = sshll.u32 %s1074_s15, 3 }
  0x10   : > { %s169_s4 = scalar_lea.vmem %s1070_s3, %s667_s28 }
  0x11   : > { %s970_s18 = scalar_lea.vmem %s1067_s0, %s906_s2 }
  0x12   : > { %v186_v3 = vld [vmem:[%s970_s18 + $0x1] sm:$0xff]  ;;  %v187_v4 = vld [vmem:[%s970_s18 + $0x11] sm:$0xff] }
  0x13   : > { %v689_v5 = vld [vmem:[%s970_s18 + $0x10] sm:$0xff]  ;;  %v838_v6 = vpack.c.bf16 %v187_v4, %v186_v3  ;;  %v690_v7 = vld [vmem:[%s970_s18 + $0x20] sm:$0xff] }
  0x14   : > { %v870_v8 = vpack.c.bf16 %v690_v7, %v689_v5  ;;  %v188_v9 = vld [vmem:[%s970_s18 + $0x21] sm:$0xff]  ;;  %v189_v10 = vld [vmem:[%s970_s18 + $0x31] sm:$0xff] }
  0x15   : > { %840 = vmatpush3.bf16.xpose.msk.msra.mxu1 %vm974_vm2, %v838_v6  ;;  %v691_v11 = vld [vmem:[%s970_s18 + $0x30] sm:$0xff]  ;;  %v692_v12 = vld [vmem:[%s970_s18 + $0x40] sm:$0xff]  ;;  %v842_v13 = vpack.c.bf16 %v189_v10, %v188_v9  ;;  %v886_v31 = vpack.c.bf16 %v188_v9, %v187_v4 }
  0x16   : > { %872 = vmatpush3.bf16.xpose.msk.msra.mxu0 %vm974_vm2, %v870_v8  ;;  %841 = vmatprep.subr.bf16.mxu1 %v926_v0  ;;  %v874_v14 = vpack.c.bf16 %v692_v12, %v691_v11  ;;  %v190_v15 = vld [vmem:[%s970_s18 + $0x41] sm:$0xff]  ;;  %v191_v16 = vld [vmem:[%s970_s18 + $0x51] sm:$0xff]  ;;  %v858_v32 = vpack.c.bf16 %v691_v11, %v690_v7 }
  0x17   : > { %873 = vmatprep.subr.bf16.mxu0 %v926_v0  ;;  %v693_v17 = vld [vmem:[%s970_s18 + $0x50] sm:$0xff]  ;;  %v694_v18 = vld [vmem:[%s970_s18 + $0x60] sm:$0xff]  ;;  %v846_v19 = vpack.c.bf16 %v191_v16, %v190_v15  ;;  %v890_v33 = vpack.c.bf16 %v190_v15, %v189_v10 }
  0x18   : > { %v878_v20 = vpack.c.bf16 %v694_v18, %v693_v17  ;;  %v192_v21 = vld [vmem:[%s970_s18 + $0x61] sm:$0xff]  ;;  %v193_v22 = vld [vmem:[%s970_s18 + $0x71] sm:$0xff]  ;;  %v862_v34 = vpack.c.bf16 %v693_v17, %v692_v12 }
  0x19   : > { %v695_v23 = vld [vmem:[%s970_s18 + $0x70] sm:$0xff]  ;;  %v696_v24 = vld [vmem:[%s970_s18 + $0x80] sm:$0xff]  ;;  %v850_v25 = vpack.c.bf16 %v193_v22, %v192_v21  ;;  %v894_v35 = vpack.c.bf16 %v192_v21, %v191_v16 }
  0x1a   : > { %v882_v26 = vpack.c.bf16 %v696_v24, %v695_v23  ;;  %v178_v27 = vld [vmem:[%s970_s18] sm:$0xff]  ;;  %v866_v37 = vpack.c.bf16 %v695_v23, %v694_v18 }
  0x1b   : > { %v854_v29 = vpack.c.bf16 %v689_v5, %v178_v27  ;;  %v713_v36 = vld [vmem:[%s970_s18 + $0x81] sm:$0xff] }
  0x1c   : > { %v898_v38 = vpack.c.bf16 %v713_v36, %v193_v22 }
  0x1d   : > { %844 = vmatpush3.bf16.xpose.msk.msra.mxu1 %vm974_vm2, %v842_v13 }
  0x1e   : > { %876 = vmatpush3.bf16.xpose.msk.msra.mxu0 %vm974_vm2, %v874_v14  ;;  %845 = vmatprep.subr.bf16.mxu1 %v926_v0 }
  0x1f   : > { %877 = vmatprep.subr.bf16.mxu0 %v926_v0 }
  0x25   : > { %848 = vmatpush3.bf16.xpose.msk.msra.mxu1 %vm974_vm2, %v846_v19 }
  0x26   : > { %880 = vmatpush3.bf16.xpose.msk.msra.mxu0 %vm974_vm2, %v878_v20  ;;  %849 = vmatprep.subr.bf16.mxu1 %v926_v0 }
  0x27   : > { %881 = vmatprep.subr.bf16.mxu0 %v926_v0 }
  0x2d   : > { %852 = vmatpush3.bf16.xpose.msk.msra.mxu1 %vm974_vm2, %v850_v25 }
  0x2e   : > { %884 = vmatpush3.bf16.xpose.msk.msra.mxu0 %vm974_vm2, %v882_v26  ;;  %853 = vmatprep.subr.bf16.mxu1 %v926_v0 }
  0x2f   : > { %885 = vmatprep.subr.bf16.mxu0 %v926_v0 }
  0x34   : > { %778 = vmatmul.mubr.msk.f32.vlgmr.msra.gmra.mrb[0].mxu1 %vm194_vm1, %v668_v28 }
  0x35   : > { %856 = vmatpush3.bf16.xpose.msk.msra.mxu1 %vm974_vm2, %v854_v29  ;;  %816 = vmatmul.mubr.msk.f32.vlgmr.msra.gmra.mrb[0].mxu0 %vm194_vm1, %v669_v30 }
  0x36   : > { %888 = vmatpush3.bf16.xpose.msk.msra.mxu0 %vm974_vm2, %v886_v31  ;;  %857 = vmatprep.subr.bf16.mxu1 %v926_v0 }
  0x37   : > { %889 = vmatprep.subr.bf16.mxu0 %v926_v0  ;;  %796 = vmatprep.mubr.msk.f32.mxu1 %vm927_vm0, %v928_v1 }
  0x38   : > { %834 = vmatprep.mubr.msk.f32.mxu0 %vm927_vm0, %v928_v1 }
  0x3d   : > { %860 = vmatpush3.bf16.xpose.msk.msra.mxu1 %vm974_vm2, %v858_v32 }
  0x3e   : > { %892 = vmatpush3.bf16.xpose.msk.msra.mxu0 %vm974_vm2, %v890_v33  ;;  %861 = vmatprep.subr.bf16.mxu1 %v926_v0 }
  0x3f   : > { %893 = vmatprep.subr.bf16.mxu0 %v926_v0 }
  0x45   : > { %864 = vmatpush3.bf16.xpose.msk.msra.mxu1 %vm974_vm2, %v862_v34 }
  0x46   : > { %896 = vmatpush3.bf16.xpose.msk.msra.mxu0 %vm974_vm2, %v894_v35  ;;  %865 = vmatprep.subr.bf16.mxu1 %v926_v0 }
  0x47   : > { %897 = vmatprep.subr.bf16.mxu0 %v926_v0 }
  0x4d   : > { %868 = vmatpush3.bf16.xpose.msk.msra.mxu1 %vm974_vm2, %v866_v37 }
  0x4e   : > { %900 = vmatpush3.bf16.xpose.msk.msra.mxu0 %vm974_vm2, %v898_v38 }
  0x54   : > { %797 = vmatmul.mubr.msk.f32.vlgmr.msra.gmra.mrb[0].mxu1 %vm194_vm1, %v171_v39 }
  0x55   : > { %835 = vmatmul.mubr.msk.f32.vlgmr.msra.gmra.mrb[0].mxu0 %vm194_vm1, %v670_v40 }
 0x127   : > { %v385_v41 = vpop.f32.mrb[0].mxu1 }
 0x128   : > { %v597_v42 = vpop.f32.mrb[0].mxu0  ;;  %v798_v44 = vpop.f32.mrb[1].mxu1 }
 0x129   : > { %v901_v45 = vadd.f32 %v597_v42, %v385_v41  ;;  %v836_v46 = vpop.f32.mrb[1].mxu0 }
 0x12b   : > { %vm602_vm3 = vcmp.ge.f32.partialorder %v901_v45, 0.0  ;;  %v604_v47 = vmul.f32 %v901_v45, %v603_v43 }
 0x12d   : > { %v605_v48 = vsel %vm602_vm3, %v901_v45, %v604_v47 }
 0x12e   : > { %607 = vst.msk [vmem:[%s169_s4] sm:$0xff] %vm606_vm4, %v605_v48 }
 0x12f PF: > { %s14_s14 = sadd.s32 1, %s924_s14  }
 0x130   : > { %p11_p4 = scmp.ge.s32.totalorder %s14_s14, 4  }
 0x132   :  { %13 = sbr.rel (!%p11_p4) target bundleno = 2 (0x2), region = 66 }

</bundles_post_ra>
